<compile_context>
chip_gen: v5e
topology: v5e:2x2
jax: 0.10.0
libtpu: 0.0.40
codegen_flags: <defaults>
</compile_context>

<pallas_src>
import functools

import jax
import jax.numpy as jnp
from jax.experimental import pallas as pl
from jax.experimental.pallas import tpu as pltpu

LANES = 128  # lane-dense packed width for gates / value slab


# ----------------------------------------------------------------------------
# Kernel: whole rollout (T steps) in one call, no grid.
# ----------------------------------------------------------------------------
def _rollout_kernel(xs_ref, h0_ref, w1_ref, wx_ref, whh_ref, w2_ref, b_ref,
                    v_ref, hT_ref, hseq_ref, *, T, B, H):
    """PyTorch GRUCell gate order (r, z, n).

    xs_ref : (T*B, D)    flattened rollout inputs
    w1_ref : (D, H)      fc1 weight
    wx_ref : (H, 128)    [W_x_r | W_x_z | W_x_n | 0]
    whh_ref: (H, 128)    [W_h_r | W_h_z | W_h_n | 0]
    w2_ref : (H, 128)    col 0 = fc2 weight, rest 0
    b_ref  : (8, 128)    row0: b1 (lanes :H)
                         row1: [b_ir+b_hr | b_iz+b_hz | b_in | 0]
                         row2: [0 | 0 | b_hn | 0]
                         row3: lane0 = b2
    v_ref  : (T*B, 128)  lane-dense value slab (col 0 = value)
    hT_ref : (B, H)      final hidden state
    hseq_ref: VMEM scratch (T*B, H) for the per-step hidden states
    """
    f32 = jnp.float32
    b = b_ref[...]

    # ---- hoisted input-side compute (batched over all T*B rows) -----------
    x = jnp.dot(xs_ref[...], w1_ref[...], preferred_element_type=f32)
    x = jnp.maximum(x + b[0:1, :H], 0.0)                         # (T*B, H)
    gi = jnp.dot(x, wx_ref[...], preferred_element_type=f32) + b[1:2, :]
    # gi lanes: [W_ir x + b_r | W_iz x + b_z | W_in x + b_in | 0]

    whh = whh_ref[...]
    b_gh = jnp.broadcast_to(b[2:3, :], (B, LANES))   # hoisted broadcast (b_hn)

    # ---- serial recurrence: 1 MXU op per step ------------------------------
    h = h0_ref[...]                                              # (B, H)
    for t in range(T):                       # static unroll (T is tiny here)
        gi_t = gi[t * B:(t + 1) * B, :]                          # (B, 128)
        gh = jnp.dot(h, whh, preferred_element_type=f32) + b_gh  # (B, 128)
        s = jax.nn.sigmoid(gi_t + gh)        # lanes [r | z | junk | junk]
        r = s[:, 0:H]
        z = s[:, H:2 * H]
        n = jnp.tanh(gi_t[:, 2 * H:3 * H] + r * gh[:, 2 * H:3 * H])
        h = (1.0 - z) * n + z * h                                # (B, H)
        hseq_ref[t * B:(t + 1) * B, :] = h

    # ---- hoisted fc2 over the whole rollout (lane-dense output) -----------
    h_seq = hseq_ref[...]                                        # (T*B, H)
    v = jnp.dot(h_seq, w2_ref[...], preferred_element_type=f32) + b[3:4, :]
    v_ref[...] = v
    hT_ref[...] = h


def _rollout_call(xs_flat, h0, kp, T, B, H):
    vmem = pl.BlockSpec(memory_space=pltpu.MemorySpace.VMEM)
    kernel = functools.partial(_rollout_kernel, T=T, B=B, H=H)
    return pl.pallas_call(
        kernel,
        out_shape=(jax.ShapeDtypeStruct((T * B, LANES), jnp.float32),
                   jax.ShapeDtypeStruct((B, H), jnp.float32)),
        in_specs=[vmem] * 7,
        out_specs=(vmem, vmem),
        scratch_shapes=[pltpu.VMEM((T * B, H), jnp.float32)],
    )(xs_flat, h0, kp["w1"], kp["wx"], kp["whh"], kp["w2"], kp["b"])


# ----------------------------------------------------------------------------
# Wrappers
# ----------------------------------------------------------------------------
@jax.jit
def trpo_critic_forward(inputs, hidden, kp):
    """Single step, matches TRPOCritic.forward(inputs, hidden) -> (v, h)."""
    B, _ = inputs.shape
    H = kp["w1"].shape[1]
    h0 = hidden.reshape(-1, H)
    v_pad, h_new = _rollout_call(inputs, h0, kp, 1, B, H)
    return v_pad[:, 0:1], h_new


@jax.jit
def trpo_critic_rollout(xs, hidden, kp):
    """T recurrent steps inside one pallas_call. Returns (vs[T,B,1], h_T)."""
    T, B, D = xs.shape
    H = kp["w1"].shape[1]
    h0 = hidden.reshape(-1, H)
    xs_flat = xs.reshape(T * B, D)
    v_pad, h_T = _rollout_call(xs_flat, h0, kp, T, B, H)
    vs = v_pad[:, 0].reshape(T, B, 1)
    return vs, h_T


# ----------------------------------------------------------------------------
# Parameter init (mirrors the PyTorch module) and packing for the kernel
# ----------------------------------------------------------------------------
def orthogonal_(key, shape, std=1.0):
    rows, cols = shape
    flat = (max(rows, cols), min(rows, cols))
    a = jax.random.normal(key, flat, dtype=jnp.float32)
    q, r = jnp.linalg.qr(a)
    d = jnp.diag(r)
    q = q * jnp.where(d == 0, 1.0, jnp.sign(d))
    if rows < cols:
        q = q.T
    return std * q[:rows, :cols]


def init_params_pt(key, input_dim, hidden_dim):
    """PyTorch-layout params matching TRPOCritic.__init__ (layer_norm=True)."""
    ks = jax.random.split(key, 6)
    H = hidden_dim
    bound = 1.0 / (H ** 0.5)
    w1 = orthogonal_(ks[0], (H, input_dim), std=1.0)            # (out, in)
    b1 = jnp.zeros((H,), jnp.float32)
    w_ih = jax.random.uniform(ks[1], (3 * H, H), minval=-bound, maxval=bound,
                              dtype=jnp.float32)                # rows r|z|n
    w_hh = jax.random.uniform(ks[2], (3 * H, H), minval=-bound, maxval=bound,
                              dtype=jnp.float32)
    b_ih = jax.random.uniform(ks[3], (3 * H,), minval=-bound, maxval=bound,
                              dtype=jnp.float32)
    b_hh = jax.random.uniform(ks[4], (3 * H,), minval=-bound, maxval=bound,
                              dtype=jnp.float32)
    w2 = orthogonal_(ks[5], (1, H), std=1.0)
    b2 = jnp.zeros((1,), jnp.float32)
    return dict(w1=w1, b1=b1, w_ih=w_ih, w_hh=w_hh, b_ih=b_ih, b_hh=b_hh,
                w2=w2, b2=b2)


def pack_params(p):
    """PyTorch layout -> packed kernel layout (5 tensors)."""
    H = p["w_hh"].shape[1]
    w1 = p["w1"].T                                               # (D, H)
    wih = p["w_ih"].T                                            # (H, 3H) cols r|z|n
    whh = p["w_hh"].T                                            # (H, 3H)
    wx_p = jnp.zeros((H, LANES), jnp.float32).at[:, :3 * H].set(wih)
    whh_p = jnp.zeros((H, LANES), jnp.float32).at[:, :3 * H].set(whh)
    w2_p = jnp.zeros((H, LANES), jnp.float32).at[:, 0].set(p["w2"][0])
    b = jnp.zeros((8, LANES), jnp.float32)
    b = b.at[0, :H].set(p["b1"])
    b = b.at[1, 0:H].set(p["b_ih"][0:H] + p["b_hh"][0:H])                 # r
    b = b.at[1, H:2 * H].set(p["b_ih"][H:2 * H] + p["b_hh"][H:2 * H])     # z
    b = b.at[1, 2 * H:3 * H].set(p["b_ih"][2 * H:3 * H])                  # b_in
    b = b.at[2, 2 * H:3 * H].set(p["b_hh"][2 * H:3 * H])                  # b_hn
    b = b.at[3, 0].set(p["b2"][0])
    return dict(w1=w1, wx=wx_p, whh=whh_p, w2=w2_p, b=b)


# ----------------------------------------------------------------------------
# Pure-JAX reference (PyTorch math, PyTorch layout)
# ----------------------------------------------------------------------------
def reference_step(inputs, hidden, p):
    H = p["w_hh"].shape[1]
    x = jnp.maximum(inputs @ p["w1"].T + p["b1"], 0.0)
    h = hidden.reshape(-1, H)
    gi = x @ p["w_ih"].T + p["b_ih"]
    gh = h @ p["w_hh"].T + p["b_hh"]
    i_r, i_z, i_n = gi[:, :H], gi[:, H:2 * H], gi[:, 2 * H:]
    h_r, h_z, h_n = gh[:, :H], gh[:, H:2 * H], gh[:, 2 * H:]
    r = jax.nn.sigmoid(i_r + h_r)
    z = jax.nn.sigmoid(i_z + h_z)
    n = jnp.tanh(i_n + r * h_n)
    h_new = (1.0 - z) * n + z * h
    v = h_new @ p["w2"].T + p["b2"]
    return v, h_new


if __name__ == "__main__":
    B = 8        # n_agents * episodes
    D_IN = 24    # critic_input_shape
    HID = 32     # args.rnn_hidden_dim
    T = 6        # rollout length

    key = jax.random.PRNGKey(0)
    k_par, k_x, k_h, k_xs = jax.random.split(key, 4)

    p_pt = init_params_pt(k_par, D_IN, HID)
    kp = pack_params(p_pt)

    inputs = jax.random.normal(k_x, (B, D_IN), dtype=jnp.float32)
    hidden = jax.random.normal(k_h, (B, HID), dtype=jnp.float32)

    # --- single-step forward (matches TRPOCritic.forward) -------------------
    v, h = trpo_critic_forward(inputs, hidden, kp)
    jax.block_until_ready((v, h))
    v_ref, h_ref = reference_step(inputs, hidden, p_pt)
    assert v.shape == (B, 1) and h.shape == (B, HID)
    assert jnp.allclose(v, v_ref, atol=1e-4, rtol=1e-4)
    assert jnp.allclose(h, h_ref, atol=1e-4, rtol=1e-4)

    # --- fused T-step rollout (entire time loop inside one pallas_call) -----
    xs = jax.random.normal(k_xs, (T, B, D_IN), dtype=jnp.float32)
    vs, h_T = trpo_critic_rollout(xs, hidden, kp)
    jax.block_until_ready((vs, h_T))

    h_run = hidden
    vs_ref = []
    for t in range(T):
        v_t, h_run = reference_step(xs[t], h_run, p_pt)
        vs_ref.append(v_t)
    vs_ref = jnp.stack(vs_ref, axis=0)
    assert vs.shape == (T, B, 1) and h_T.shape == (B, HID)
    assert jnp.allclose(vs, vs_ref, atol=1e-3, rtol=1e-3)
    assert jnp.allclose(h_T, h_run, atol=1e-3, rtol=1e-3)

    print("KERNEL_OK")
</pallas_src>

<mosaic_0001>
module attributes {stable_mosaic.version = 11 : i64} {
  func.func @_rollout_kernel(%arg0: memref<8x24xf32, #tpu.memory_space<vmem>>, %arg1: memref<8x32xf32, #tpu.memory_space<vmem>>, %arg2: memref<24x32xf32, #tpu.memory_space<vmem>>, %arg3: memref<32x128xf32, #tpu.memory_space<vmem>>, %arg4: memref<32x128xf32, #tpu.memory_space<vmem>>, %arg5: memref<32x128xf32, #tpu.memory_space<vmem>>, %arg6: memref<8x128xf32, #tpu.memory_space<vmem>>, %arg7: memref<8x128xf32, #tpu.memory_space<vmem>>, %arg8: memref<8x32xf32, #tpu.memory_space<vmem>>, %arg9: memref<8x32xf32, #tpu.memory_space<vmem>>) attributes {dimension_semantics = [], scalar_prefetch = 0 : i64, scratch_operands = 1 : i64, tpu.core_type = #tpu.core_type<tc>} {
    %c0 = arith.constant 0 : index
    %c0_0 = arith.constant 0 : index
    %0 = vector.load %arg6[%c0, %c0_0] : memref<8x128xf32, #tpu.memory_space<vmem>>, vector<8x128xf32>
    %c0_1 = arith.constant 0 : index
    %c0_2 = arith.constant 0 : index
    %1 = vector.load %arg0[%c0_1, %c0_2] : memref<8x24xf32, #tpu.memory_space<vmem>>, vector<8x24xf32>
    %c0_3 = arith.constant 0 : index
    %c0_4 = arith.constant 0 : index
    %2 = vector.load %arg2[%c0_3, %c0_4] : memref<24x32xf32, #tpu.memory_space<vmem>>, vector<24x32xf32>
    %cst = arith.constant dense<0.000000e+00> : vector<8x32xf32>
    %3 = tpu.matmul %1, %2, %cst {dimension_numbers = #tpu.dot_dimension_numbers<[1], [0], [0], [1], [0, 0, 1, 1], [], []>} : vector<8x24xf32>, vector<24x32xf32>, vector<8x32xf32> -> vector<8x32xf32>
    %4 = vector.extract_strided_slice %0 {offsets = [0, 0], sizes = [1, 32], strides = [1, 1]} : vector<8x128xf32> to vector<1x32xf32>
    %5 = vector.broadcast %4 : vector<1x32xf32> to vector<8x32xf32>
    %6 = arith.addf %3, %5 : vector<8x32xf32>
    %cst_5 = arith.constant 0.000000e+00 : f32
    %7 = vector.broadcast %cst_5 : f32 to vector<8x32xf32>
    %8 = arith.maximumf %6, %7 : vector<8x32xf32>
    %c0_6 = arith.constant 0 : index
    %c0_7 = arith.constant 0 : index
    %9 = vector.load %arg3[%c0_6, %c0_7] : memref<32x128xf32, #tpu.memory_space<vmem>>, vector<32x128xf32>
    %cst_8 = arith.constant dense<0.000000e+00> : vector<8x128xf32>
    %10 = tpu.matmul %8, %9, %cst_8 {dimension_numbers = #tpu.dot_dimension_numbers<[1], [0], [0], [1], [0, 0, 1, 1], [], []>} : vector<8x32xf32>, vector<32x128xf32>, vector<8x128xf32> -> vector<8x128xf32>
    %11 = vector.extract_strided_slice %0 {offsets = [1, 0], sizes = [1, 128], strides = [1, 1]} : vector<8x128xf32> to vector<1x128xf32>
    %12 = vector.broadcast %11 : vector<1x128xf32> to vector<8x128xf32>
    %13 = arith.addf %10, %12 : vector<8x128xf32>
    %c0_9 = arith.constant 0 : index
    %c0_10 = arith.constant 0 : index
    %14 = vector.load %arg4[%c0_9, %c0_10] : memref<32x128xf32, #tpu.memory_space<vmem>>, vector<32x128xf32>
    %15 = vector.extract_strided_slice %0 {offsets = [2, 0], sizes = [1, 128], strides = [1, 1]} : vector<8x128xf32> to vector<1x128xf32>
    %16 = vector.shape_cast %15 : vector<1x128xf32> to vector<1x128xf32>
    %17 = vector.broadcast %16 : vector<1x128xf32> to vector<8x128xf32>
    %c0_11 = arith.constant 0 : index
    %c0_12 = arith.constant 0 : index
    %18 = vector.load %arg1[%c0_11, %c0_12] : memref<8x32xf32, #tpu.memory_space<vmem>>, vector<8x32xf32>
    %cst_13 = arith.constant dense<0.000000e+00> : vector<8x128xf32>
    %19 = tpu.matmul %18, %14, %cst_13 {dimension_numbers = #tpu.dot_dimension_numbers<[1], [0], [0], [1], [0, 0, 1, 1], [], []>} : vector<8x32xf32>, vector<32x128xf32>, vector<8x128xf32> -> vector<8x128xf32>
    %20 = arith.addf %19, %17 : vector<8x128xf32>
    %21 = arith.addf %13, %20 : vector<8x128xf32>
    %22 = arith.negf %21 : vector<8x128xf32>
    %23 = math.exp %22 : vector<8x128xf32>
    %cst_14 = arith.constant 1.000000e+00 : f32
    %24 = vector.broadcast %cst_14 : f32 to vector<8x128xf32>
    %25 = arith.addf %24, %23 : vector<8x128xf32>
    %26 = arith.divf %24, %25 : vector<8x128xf32>
    %27 = vector.extract_strided_slice %26 {offsets = [0, 0], sizes = [8, 32], strides = [1, 1]} : vector<8x128xf32> to vector<8x32xf32>
    %28 = vector.extract_strided_slice %26 {offsets = [0, 32], sizes = [8, 32], strides = [1, 1]} : vector<8x128xf32> to vector<8x32xf32>
    %29 = vector.extract_strided_slice %13 {offsets = [0, 64], sizes = [8, 32], strides = [1, 1]} : vector<8x128xf32> to vector<8x32xf32>
    %30 = vector.extract_strided_slice %20 {offsets = [0, 64], sizes = [8, 32], strides = [1, 1]} : vector<8x128xf32> to vector<8x32xf32>
    %31 = arith.mulf %27, %30 : vector<8x32xf32>
    %32 = arith.addf %29, %31 : vector<8x32xf32>
    %33 = math.tanh %32 : vector<8x32xf32>
    %cst_15 = arith.constant 1.000000e+00 : f32
    %34 = vector.broadcast %cst_15 : f32 to vector<8x32xf32>
    %35 = arith.subf %34, %28 : vector<8x32xf32>
    %36 = arith.mulf %35, %33 : vector<8x32xf32>
    %37 = arith.mulf %28, %18 : vector<8x32xf32>
    %38 = arith.addf %36, %37 : vector<8x32xf32>
    %c0_16 = arith.constant 0 : index
    %c0_17 = arith.constant 0 : index
    %39 = vector.load %arg9[%c0_16, %c0_17] : memref<8x32xf32, #tpu.memory_space<vmem>>, vector<8x32xf32>
    tpu.vector_store %arg9[%c0_16, %c0_17], %38 {strides = array<i32>} : memref<8x32xf32, #tpu.memory_space<vmem>>, vector<8x32xf32>,
    %c0_18 = arith.constant 0 : index
    %c0_19 = arith.constant 0 : index
    %40 = vector.load %arg9[%c0_18, %c0_19] : memref<8x32xf32, #tpu.memory_space<vmem>>, vector<8x32xf32>
    %c0_20 = arith.constant 0 : index
    %c0_21 = arith.constant 0 : index
    %41 = vector.load %arg5[%c0_20, %c0_21] : memref<32x128xf32, #tpu.memory_space<vmem>>, vector<32x128xf32>
    %cst_22 = arith.constant dense<0.000000e+00> : vector<8x128xf32>
    %42 = tpu.matmul %40, %41, %cst_22 {dimension_numbers = #tpu.dot_dimension_numbers<[1], [0], [0], [1], [0, 0, 1, 1], [], []>} : vector<8x32xf32>, vector<32x128xf32>, vector<8x128xf32> -> vector<8x128xf32>
    %43 = vector.extract_strided_slice %0 {offsets = [3, 0], sizes = [1, 128], strides = [1, 1]} : vector<8x128xf32> to vector<1x128xf32>
    %44 = vector.broadcast %43 : vector<1x128xf32> to vector<8x128xf32>
    %45 = arith.addf %42, %44 : vector<8x128xf32>
    %c0_23 = arith.constant 0 : index
    %c0_24 = arith.constant 0 : index
    %46 = vector.load %arg7[%c0_23, %c0_24] : memref<8x128xf32, #tpu.memory_space<vmem>>, vector<8x128xf32>
    tpu.vector_store %arg7[%c0_23, %c0_24], %45 {strides = array<i32>} : memref<8x128xf32, #tpu.memory_space<vmem>>, vector<8x128xf32>,
    %c0_25 = arith.constant 0 : index
    %c0_26 = arith.constant 0 : index
    %47 = vector.load %arg8[%c0_25, %c0_26] : memref<8x32xf32, #tpu.memory_space<vmem>>, vector<8x32xf32>
    tpu.vector_store %arg8[%c0_25, %c0_26], %38 {strides = array<i32>} : memref<8x32xf32, #tpu.memory_space<vmem>>, vector<8x32xf32>,
    return
  }
}

</mosaic_0001>

<bundles_post_ra>
// kernel: trpo_critic_forward.1
= control target key start
LH: loop header
LB: loop body
LE: loop exit
PB: predicated region body
PF: predicated region fallthrough
CT: control target
= control target key end

     0   :  { %14 = vsyncpa [#allocation4], 0  ;;  %s645_s0 = inlined_call_operand.hbm [shape: f32[8,24], index: 0, kind: input, shape index: {}]   ;;  %s646_s1 = inlined_call_operand.hbm [shape: f32[8,32], index: 1, kind: input, shape index: {}]   ;;  %s647_s2 = inlined_call_operand.hbm [shape: f32[24,32], index: 2, kind: input, shape index: {}]   ;;  %s648_s3 = inlined_call_operand.hbm [shape: f32[32,128], index: 3, kind: input, shape index: {}]   ;;  %s649_s4 = inlined_call_operand.hbm [shape: f32[32,128], index: 4, kind: input, shape index: {}]   ;;  %s650_s5 = inlined_call_operand.hbm [shape: f32[32,128], index: 5, kind: input, shape index: {}]   ;;  %s651_s6 = inlined_call_operand.hbm [shape: f32[8,128], index: 6, kind: input, shape index: {}]   ;;  %s652_s7 = inlined_call_operand.vmem [shape: f32[8,128], index: 7, kind: output, shape index: {0}]   ;;  %s653_s8 = inlined_call_operand.hbm [shape: f32[8,32], index: 8, kind: output, shape index: {1}]  }
   0x1   :  { %15 = vsyncpa [#allocation7], 0 }
   0x2   :  { %16 = vsyncpa [#allocation10], 0 }
   0x3   :  { %17 = vsyncpa [#allocation13], 0  ;;  %s35_s29 = sshll.u32 %s646_s1, 4  ;;  %s36_s29 = int_to_ptr.hbm [resolvable:$true] %s35_s29 }
   0x4   :  { %18 = vsyncpa [#allocation5], 0  ;;  %s549_s30 = smov [#allocation6]   ;;  %s58_s12 = sshll.u32 %s648_s3, 4  ;;  %s59_s12 = int_to_ptr.hbm [resolvable:$true] %s58_s12 }
   0x5   :  { %s37_s9 = sshll.u32 %s549_s30, 4  ;;  %s550_s13 = smov [#allocation9]   ;;  %s38_s9 = int_to_ptr.vmem [resolvable:$true] %s37_s9 }
   0x6   :  { %40 = dma.hbm_to_vmem [thread:$0]  %s36_s29, 128, %s38_s9, [#allocation7]  }
   0x7   :  { %s60_s14 = sshll.u32 %s550_s13, 4  ;;  %s84_s17 = sshll.u32 %s650_s5, 4  ;;  %s61_s14 = int_to_ptr.vmem [resolvable:$true] %s60_s14  ;;  %s85_s17 = int_to_ptr.hbm [resolvable:$true] %s84_s17 }
   0x8   :  { %s551_s1 = smov 128   ;;  %s552_s18 = smov 8  }
   0x9   :  { %66 = dma.hbm_to_vmem [thread:$0]  %s59_s12, 512, %s61_s14, [#allocation10], %s551_s1, %s551_s1, %s552_s18  }
   0xa   :  { %s24_s21 = sshll.u32 %s645_s0, 4  ;;  %s553_s22 = smov [#allocation12]   ;;  %s25_s21 = int_to_ptr.hbm [resolvable:$true] %s24_s21 }
   0xb   :  { %s86_s23 = sshll.u32 %s553_s22, 4  ;;  %s554_s3 = smov [#allocation3]   ;;  %s87_s23 = int_to_ptr.vmem [resolvable:$true] %s86_s23 }
   0xc   :  { %92 = dma.hbm_to_vmem [thread:$0]  %s85_s17, 512, %s87_s23, [#allocation13], %s551_s1, %s551_s1, %s552_s18  }
   0xd   :  { %s26_s24 = sshll.u32 %s554_s3, 4  ;;  %s45_s5 = sshll.u32 %s647_s2, 4  ;;  %s27_s24 = int_to_ptr.vmem [resolvable:$true] %s26_s24  ;;  %s46_s5 = int_to_ptr.hbm [resolvable:$true] %s45_s5 }
   0xe   :  { %29 = dma.hbm_to_vmem [thread:$0]  %s25_s21, 128, %s27_s24, [#allocation4]  }
   0xf   :  { %s71_s29 = sshll.u32 %s649_s4, 4  ;;  %s555_s30 = smov [#allocation8]   ;;  %s72_s29 = int_to_ptr.hbm [resolvable:$true] %s71_s29 }
  0x10   :  { %s47_s0 = sshll.u32 %s555_s30, 4  ;;  %s556_s9 = smov [#allocation11]   ;;  %s48_s0 = int_to_ptr.vmem [resolvable:$true] %s47_s0 }
  0x11   :  { %53 = dma.hbm_to_vmem [thread:$0]  %s46_s5, 384, %s48_s0, [#allocation7], %s551_s1, %s551_s1, %s552_s18  }
  0x12   :  { %s73_s10 = sshll.u32 %s556_s9, 4  ;;  %s98_s13 = sshll.u32 %s651_s6, 4  ;;  %s74_s10 = int_to_ptr.vmem [resolvable:$true] %s73_s10  ;;  %s99_s13 = int_to_ptr.hbm [resolvable:$true] %s98_s13 }
  0x13   :  { %79 = dma.hbm_to_vmem [thread:$0]  %s72_s29, 512, %s74_s10, [#allocation10], %s551_s1, %s551_s1, %s552_s18  }
  0x14   :  { %s557_s2 = smov [#allocation14]  }
  0x15   :  { %s100_s14 = sshll.u32 %s557_s2, 4  ;;  %s101_s14 = int_to_ptr.vmem [resolvable:$true] %s100_s14 }
  0x16   :  { %103 = dma.hbm_to_vmem [thread:$0]  %s99_s13, 128, %s101_s14, [#allocation13]  }
  0x17   :  { %539 = dma.done.wait [#allocation4], 128  }
  0x18   :  { %540 = vsyncadd [#allocation4], 4294967168 }
  0x19   :  { %541 = dma.done.wait [#allocation7], 512  }
  0x1a   :  { %542 = vsyncadd [#allocation7], 4294966784 }
  0x1b   :  { %543 = dma.done.wait [#allocation10], 1024  }
  0x1c   :  { %544 = vsyncadd [#allocation10], 4294966272 }
  0x1d   :  { %545 = dma.done.wait [#allocation13], 640  }
  0x1e   :  { %546 = vsyncadd [#allocation13], 4294966656  ;;  %v136_v0 = vld [vmem:[#allocation8 + $0x10] sm:$0xff]  ;;  %v135_v1 = vld [vmem:[#allocation8 + $0x8] sm:$0xff]  ;;  %vm138_vm0 = vcmask 195584   ;;  %vm168_vm1 = vcmask 261120  }
  0x1f   :  { %155 = vmatpush.msra.mxu0 %v136_v0  ;;  %v195_v2 = vld [vmem:[#allocation11 + $0x18] sm:$0xff]  ;;  %v194_v3 = vld [vmem:[#allocation11 + $0x10] sm:$0xff]  ;;  %v134_v4 = vld [vmem:[#allocation8] sm:$0xff]  ;;  %s558_s4 = smov 64   ;;  %s559_s6 = smov 96  }
  0x20   :  { %213 = vmatpush.msra.mxu2 %v195_v2  ;;  %v133_v5 = vld [vmem:[#allocation3] sm:$0xff]  ;;  %v193_v6 = vld [vmem:[#allocation11 + $0x8] sm:$0xff]  ;;  %v192_v8 = vld [vmem:[#allocation11] sm:$0xff]  ;;  %s560_s15 = smov 32   ;;  %s561_s16 = smov [#allocation15]  }
  0x21   :  { %156 = vmatpush.msra.mxu0 %v135_v1  ;;  %v166_v7 = vld [vmem:[#allocation9 + $0x18] sm:$0xff]  ;;  %v197_v9 = vld [vmem:[#allocation6] sm:$0xff]  ;;  %v165_v10 = vld [vmem:[#allocation9 + $0x10] sm:$0xff]  ;;  %s306_s17 = sshll.u32 %s561_s16, 4  ;;  %s308_s19 = sshll.u32 %s653_s8, 4  ;;  %s307_s17 = int_to_ptr.vmem [resolvable:$true] %s306_s17  ;;  %s309_s19 = int_to_ptr.hbm [resolvable:$true] %s308_s19 }
  0x22   :  { %214 = vmatpush.msra.mxu2 %v194_v3  ;;  %184 = vmatpush.msra.mxu1 %v166_v7  ;;  %v164_v11 = vld [vmem:[#allocation9 + $0x8] sm:$0xff]  ;;  %v163_v12 = vld [vmem:[#allocation9] sm:$0xff]  ;;  %v272_v49 = vld [vmem:[#allocation12 + $0x18] sm:$0xff] }
  0x23   :  { %157 = vmatpush.msra.mxu0 %v134_v4  ;;  %v629_v13 = vld [vmem:[#allocation14] sm:$0xff]  ;;  %v271_v50 = vld [vmem:[#allocation12 + $0x10] sm:$0xff]  ;;  %289 = vmatpush.msra.mxu3 %v272_v49  ;;  %v270_v51 = vld [vmem:[#allocation12 + $0x8] sm:$0xff] }
  0x24   :  { %323 = vmatmul.msk.f32.vlgmr.msra.gmra.mxu0 %vm138_vm0, %v133_v5  ;;  %215 = vmatpush.msra.mxu2 %v193_v6  ;;  %v137_v14 = vperm.slane %v629_v13, 0  ;;  %v196_v18 = vperm.slane %v629_v13, 2  ;;  %v167_v21 = vperm.slane %v629_v13, 1  ;;  %v269_v52 = vld [vmem:[#allocation12] sm:$0xff]  ;;  %v273_v55 = vperm.slane %v629_v13, 3 }
  0x25   :  { %185 = vmatpush.msra.mxu1 %v165_v10  ;;  %290 = vmatpush.msra.mxu3 %v271_v50 }
  0x26   :  { %216 = vmatpush.msra.mxu2 %v192_v8 }
  0x27   :  { %325 = vmatmul.msk.f32.vlgmr.msra.gmra.mxu2 %vm168_vm1, %v197_v9  ;;  %186 = vmatpush.msra.mxu1 %v164_v11 }
  0x28   :  { %291 = vmatpush.msra.mxu3 %v270_v51 }
  0x29   :  { %187 = vmatpush.msra.mxu1 %v163_v12 }
  0x2a   :  { %292 = vmatpush.msra.mxu3 %v269_v52 }
  0xa1   :  { %v159_v15 = vpop.f32.mrf.mxu0 }
  0xa2   :  { %v160_v16 = vadd.f32 %v159_v15, %v137_v14 }
  0xa4   :  { %v162_v17 = vmax.f32 %v160_v16, 0.0 }
  0xa6   :  { %324 = vmatmul.msk.f32.vlgmr.msra.gmra.mxu1 %vm168_vm1, %v162_v17 }
  0xaa   :  { %v218_v19 = vpop.f32.mrf.mxu2 }
  0xab   :  { %v219_v20 = vadd.f32 %v218_v19, %v196_v18 }
  0xad   :  { %242 = vrot.lane.b32.xlu0 %v219_v20, %s558_s4 }
 0x11f   :  { %v243_v35 = vpop.permute.xlu0 %242 }
 0x123   :  { %v189_v22 = vpop.f32.mrf.mxu1 }
 0x124   :  { %v190_v23 = vadd.f32 %v189_v22, %v167_v21 }
 0x126   :  { %v221_v24 = vadd.f32 %v219_v20, %v190_v23 }
 0x128   :  { %v326_v25 = vmul.f32 -1.442695, %v221_v24 }
 0x12a   :  { %341 = vpow2.f32 %v326_v25 }
 0x130   :  { %v342_v26 = vpop.eup %341 }
 0x131   :  { %v225_v27 = vadd.f32 1.0, %v342_v26 }
 0x133   :  { %343 = vrcp.f32 %v225_v27  ;;  %v237_v31 = vand.u32 2147483648, %v225_v27  ;;  %v235_v33 = vand.u32 2147483647, %v225_v27  ;;  %vm231_vm3 = vweird.f32 %v225_v27 }
 0x135   :  { %v238_v36 = vor.u32 1.1754944e-38, %v237_v31  ;;  %vm236_vm5 = vcmp.eq.f32.partialorder %v235_v33, 8.507059e+37 }
 0x139   :  { %v344_v28 = vpop.eup %343 }
 0x13a   :  { %v227_v29 = vmul.f32 %v344_v28, %v225_v27  ;;  %vm232_vm2 = vweird.f32 %v344_v28 }
 0x13b   :  { %vm233_vm4 = vmor %vm231_vm3, %vm232_vm2 }
 0x13c   :  { %v228_v30 = vsub.f32 1.0, %v227_v29 }
 0x13e   :  { %v229_v32 = vmul.f32 %v344_v28, %v228_v30 }
 0x140   :  { %v230_v34 = vadd.f32 %v344_v28, %v229_v32 }
 0x142   :  { %v234_v37 = vsel %vm233_vm4, %v344_v28, %v230_v34 }
 0x143   :  { %v239_v38 = vsel %vm236_vm5, %v238_v36, %v234_v37 }
 0x144   :  { %v245_v39 = vmul.f32 %v243_v35, %v239_v38  ;;  %v252_v44 = vsub.f32 1.0, %v239_v38 }
 0x146   :  { %247 = vrot.lane.b32.xlu0 %v245_v39, %s558_s4 }
 0x1b8   :  { %v248_v40 = vpop.permute.xlu0 %247 }
 0x1b9   :  { %v250_v41 = vadd.f32 %v248_v40, %v190_v23 }
 0x1bb   :  { %345 = vtanh.f32 %v250_v41 }
 0x1c1   :  { %v346_v42 = vpop.eup %345 }
 0x1c2   :  { %254 = vrot.lane.b32.xlu1 %v346_v42, %s559_s6 }
 0x1ca   :  { %258 = vrot.lane.b32.xlu1 %v197_v9, %s560_s15 }
 0x234   :  { %v255_v43 = vpop.permute.xlu1 %254 }
 0x235   :  { %v257_v46 = vmul.f32 %v255_v43, %v252_v44 }
 0x23c   :  { %v259_v45 = vpop.permute.xlu1 %258 }
 0x23d   :  { %v261_v47 = vmul.f32 %v259_v45, %v239_v38 }
 0x23f   :  { %v262_v48 = vadd.f32 %v261_v47, %v257_v46 }
 0x241   :  { %264 = vrot.lane.b32.xlu2 %v262_v48, %s559_s6 }
 0x29b   :  { %v265_v53 = vpop.permute.xlu2 %264 }
 0x29c   :  { %267 = vst.msk [vmem:[#allocation2] sm:$0xff] %vm168_vm1, %v265_v53 }
 0x29d   :  { %298 = vst.msk [vmem:[#allocation15] sm:$0xff] %vm168_vm1, %v265_v53 }
 0x29e   :  { %311 = dma.vmem_to_hbm [thread:$0]  %s307_s17, 128, %s309_s19, [#allocation5]  }
 0x2a3   :  { %v268_v54 = vld [vmem:[#allocation2] sm:$0xff] }
 0x2a4   :  { %327 = vmatmul.msk.f32.vlgmr.msra.gmra.mxu3 %vm168_vm1, %v268_v54 }
 0x327   :  { %v294_v56 = vpop.f32.mrf.mxu3 }
 0x328   :  { %v295_v57 = vadd.f32 %v294_v56, %v273_v55 }
 0x32a   :  { %297 = vst [vmem:[%s652_s7] sm:$0xff] %v295_v57 }
 0x32b   :  { %547 = dma.done.wait [#allocation5], 128  }
 0x32c   :  { %548 = vsyncadd [#allocation5], 4294967168 }
 0x32d   :  { %318 = vsyncpa [#allocation4], 1 }
 0x32e   :  { %319 = vsyncpa [#allocation7], 1 }
 0x32f   :  { %320 = vsyncpa [#allocation10], 1 }
 0x330   :  { %321 = vsyncpa [#allocation13], 1 }
 0x331   :  { %322 = vsyncpa [#allocation5], 1 }

</bundles_post_ra>
